<compile_context>
chip_gen: v7x
topology: tpu7x:2x2x1
jax: 0.10.0
libtpu: 0.0.40
codegen_flags: <defaults>
</compile_context>

<pallas_src>
import functools

import jax
import jax.numpy as jnp
from jax.experimental import pallas as pl
from jax.experimental.pallas import tpu as pltpu

_TILE_COLS = 1024   # lane-dense: multiple of 128
_TILE_ROWS = 512    # 512 x 1024 x 4B = 2 MiB per f32 block


def _round_up(a: int, b: int) -> int:
    return ((a + b - 1) // b) * b


def relu6_kernel(x_ref, o_ref):
    # relu6(x) = min(max(x, 0), 6) — pure VPU elementwise work on the tile.
    x = x_ref[...]
    zero = jnp.zeros((), dtype=x.dtype)
    six = jnp.full((), 6, dtype=x.dtype)
    o_ref[...] = jnp.minimum(jnp.maximum(x, zero), six)


@functools.partial(jax.jit, static_argnames=())
def relu6_pallas(x: jax.Array) -> jax.Array:
    """Elementwise relu6 via a tiled, lane-dense Pallas kernel.

    Works for any input shape: flattens, pads to a (rows, 1024) slab with rows
    a multiple of the row-tile, runs a 1-D row grid, then slices back.
    """
    orig_shape = x.shape
    n = int(x.size)
    if n == 0:
        return x

    cols = _TILE_COLS
    rows = pl.cdiv(n, cols)
    # Row tile: multiple of 8 sublanes, capped at _TILE_ROWS (2 MiB blocks).
    tm = min(_TILE_ROWS, _round_up(rows, 8))
    rows_p = _round_up(rows, tm)
    padded = rows_p * cols
    itemsize = jnp.dtype(x.dtype).itemsize

    flat = jnp.ravel(x)
    if padded != n:
        flat = jnp.pad(flat, (0, padded - n))
    x2d = flat.reshape(rows_p, cols)

    out2d = pl.pallas_call(
        relu6_kernel,
        out_shape=jax.ShapeDtypeStruct((rows_p, cols), x.dtype),
        grid=(rows_p // tm,),
        in_specs=[pl.BlockSpec((tm, cols), lambda i: (i, 0))],
        out_specs=pl.BlockSpec((tm, cols), lambda i: (i, 0)),
        input_output_aliases={0: 0},
        compiler_params=pltpu.CompilerParams(
            dimension_semantics=("parallel",),
        ),
        cost_estimate=pl.CostEstimate(
            flops=2 * padded,
            transcendentals=0,
            bytes_accessed=2 * padded * itemsize,
        ),
    )(x2d)

    return out2d.reshape(-1)[:n].reshape(orig_shape)


if __name__ == "__main__":
    key = jax.random.PRNGKey(0)

    # Primary check: matches the reference script's input x = torch.randn(1, 6).
    # Scale so some values exceed 6 / go below 0 to exercise both clamps.
    x_small = jax.random.normal(key, (1, 6), dtype=jnp.float32) * 4.0
    out_small = jax.block_until_ready(relu6_pallas(x_small))
    ref_small = jnp.clip(x_small, 0.0, 6.0)
    assert out_small.shape == x_small.shape and out_small.dtype == x_small.dtype
    assert jnp.allclose(out_small, ref_small), (out_small, ref_small)

    # Secondary check: exercises the multi-tile row grid (grid=(2,)).
    x_big = jax.random.normal(jax.random.PRNGKey(1), (1024, 1024),
                              dtype=jnp.float32) * 4.0
    out_big = jax.block_until_ready(relu6_pallas(x_big))
    ref_big = jnp.clip(x_big, 0.0, 6.0)
    assert out_big.shape == x_big.shape and out_big.dtype == x_big.dtype
    assert jnp.allclose(out_big, ref_big)

    print("KERNEL_OK")
</pallas_src>

<mosaic_0001>
module attributes {stable_mosaic.version = 11 : i64} {
  func.func @relu6_kernel(%arg0: i32, %arg1: memref<8x1024xf32, #tpu.memory_space<vmem>>, %arg2: memref<8x1024xf32, #tpu.memory_space<vmem>>) attributes {dimension_semantics = [#tpu.dimension_semantics<parallel>], iteration_bounds = array<i64: 1>, scalar_prefetch = 0 : i64, scratch_operands = 0 : i64, tpu.core_type = #tpu.core_type<tc>, window_params = [{transform_indices = @transform_0, window_bounds = array<i64: 8, 1024>}, {transform_indices = @transform_1, window_bounds = array<i64: 8, 1024>}]} {
    %c0 = arith.constant 0 : index
    %c0_0 = arith.constant 0 : index
    %0 = vector.load %arg1[%c0, %c0_0] : memref<8x1024xf32, #tpu.memory_space<vmem>>, vector<8x1024xf32>
    %cst = arith.constant 0.000000e+00 : f32
    %1 = vector.broadcast %cst : f32 to vector<8x1024xf32>
    %2 = arith.maximumf %0, %1 : vector<8x1024xf32>
    %cst_1 = arith.constant 6.000000e+00 : f32
    %3 = vector.broadcast %cst_1 : f32 to vector<8x1024xf32>
    %4 = arith.minimumf %2, %3 : vector<8x1024xf32>
    %c0_2 = arith.constant 0 : index
    %c0_3 = arith.constant 0 : index
    %5 = vector.load %arg2[%c0_2, %c0_3] : memref<8x1024xf32, #tpu.memory_space<vmem>>, vector<8x1024xf32>
    tpu.vector_store %arg2[%c0_2, %c0_3], %4 {strides = array<i32>} : memref<8x1024xf32, #tpu.memory_space<vmem>>, vector<8x1024xf32>,
    return
  }
  func.func @transform_0(%arg0: i32) -> (i32, i32) {
    %c0_i32 = arith.constant 0 : i32
    %c0_i32_0 = arith.constant 0 : i32
    return %arg0, %c0_i32 : i32, i32
  }
  func.func @transform_1(%arg0: i32) -> (i32, i32) {
    %c0_i32 = arith.constant 0 : i32
    %c0_i32_0 = arith.constant 0 : i32
    return %arg0, %c0_i32 : i32, i32
  }
}

</mosaic_0001>

<bundles_post_ra>
// kernel: relu6_pallas.1
= control target key start
LH: loop header
LB: loop body
LE: loop exit
PB: predicated region body
PF: predicated region fallthrough
CT: control target
= control target key end

     0   :  { %s102_s0 = inlined_call_operand.vmem [shape: f32[8,1024], index: 0, kind: input, shape index: {}, may-alias: {0,1}]   ;;  %s103_s1 = inlined_call_operand.vmem [shape: f32[8,1024], index: 1, kind: output, shape index: {}, may-alias: {0,1}]  }
   0x1   :  { %v8_v0 = vld [vmem:[%s102_s0] sm:$0xff]  ;;  %v9_v1 = vld [vmem:[%s102_s0 + $0x8] sm:$0xff]  ;;  %v10_v2 = vld [vmem:[%s102_s0 + $0x10] sm:$0xff] }
   0x2   :  { %v16_v3 = vmax.f32 %v8_v0, 0.0  ;;  %v17_v4 = vmax.f32 %v9_v1, 0.0  ;;  %v18_v5 = vmax.f32 %v10_v2, 0.0  ;;  %v11_v6 = vld [vmem:[%s102_s0 + $0x18] sm:$0xff]  ;;  %v12_v7 = vld [vmem:[%s102_s0 + $0x20] sm:$0xff]  ;;  %v13_v8 = vld [vmem:[%s102_s0 + $0x28] sm:$0xff] }
   0x3   :  { %v19_v9 = vmax.f32 %v11_v6, 0.0  ;;  %v20_v10 = vmax.f32 %v12_v7, 0.0  ;;  %v21_v11 = vmax.f32 %v13_v8, 0.0  ;;  %v14_v12 = vld [vmem:[%s102_s0 + $0x30] sm:$0xff]  ;;  %v15_v13 = vld [vmem:[%s102_s0 + $0x38] sm:$0xff] }
   0x4   :  { %v24_v14 = vmin.f32 %v16_v3, 6.0  ;;  %v25_v15 = vmin.f32 %v17_v4, 6.0  ;;  %v26_v16 = vmin.f32 %v18_v5, 6.0  ;;  %v22_v17 = vmax.f32 %v14_v12, 0.0 }
   0x5   :  { %v27_v18 = vmin.f32 %v19_v9, 6.0  ;;  %v28_v19 = vmin.f32 %v20_v10, 6.0  ;;  %v29_v20 = vmin.f32 %v21_v11, 6.0  ;;  %v23_v21 = vmax.f32 %v15_v13, 0.0 }
   0x6   :  { %32 = vst [vmem:[%s103_s1] sm:$0xff] %v24_v14  ;;  %33 = vst [vmem:[%s103_s1 + $0x8] sm:$0xff] %v25_v15  ;;  %v30_v22 = vmin.f32 %v22_v17, 6.0 }
   0x7   :  { %34 = vst [vmem:[%s103_s1 + $0x10] sm:$0xff] %v26_v16  ;;  %35 = vst [vmem:[%s103_s1 + $0x18] sm:$0xff] %v27_v18  ;;  %v31_v23 = vmin.f32 %v23_v21, 6.0 }
   0x8   :  { %36 = vst [vmem:[%s103_s1 + $0x20] sm:$0xff] %v28_v19  ;;  %37 = vst [vmem:[%s103_s1 + $0x28] sm:$0xff] %v29_v20 }
   0x9   :  { %38 = vst [vmem:[%s103_s1 + $0x30] sm:$0xff] %v30_v22  ;;  %39 = vst [vmem:[%s103_s1 + $0x38] sm:$0xff] %v31_v23 }

</bundles_post_ra>
